<compile_context>
chip_gen: v7x
topology: tpu7x:2x2x1
jax: 0.10.0
libtpu: 0.0.40
codegen_flags: <defaults>
</compile_context>

<pallas_src>
import functools

import jax
import jax.numpy as jnp
from jax.experimental import pallas as pl
from jax.experimental.pallas import tpu as pltpu


def _shift_lanes_left(x, off, S_pad, use_roll):
    """out[:, j] = x[:, (j + off) % S_pad]  (static circular left shift)."""
    if off == 0:
        return x
    if use_roll:
        # jnp.roll semantics: out[:, j] = x[:, (j - shift) % n]; shift = -off.
        return pltpu.roll(x, shift=S_pad - off, axis=1)
    # Legacy path (lane slice + concat); only used if roll fails to lower.
    return jnp.concatenate([x[:, off:], x[:, :off]], axis=1)


def _fused_conv3x3_kernel(x_ref, w_ref, b_ref, k_ref, v_ref, patches_ref, *,
                          Wp, Ck, Nb, Cin_pad, S_pad, use_roll):
    """One grid step: Nb images, both conv heads, one MXU pass.

    x_ref:       (Nb, Cin_pad, S_pad)      bf16  zero-padded images, spatial
                                                 flattened row-major, row
                                                 stride Wp = W + 2.
    w_ref:       (Cout, 9*Cin_pad)         bf16  fused key|value weights,
                                                 K index = (dy*3+dx)*Cin_pad+cin.
    b_ref:       (Cout, 1)                 f32   fused bias.
    k_ref:       (Nb, Ck, S_pad)
    v_ref:       (Nb, Cv, S_pad)
    patches_ref: (9*Cin_pad, Nb*S_pad)     bf16  VMEM scratch (im2col slab).
    """
    # im2col: output lane j = oh*Wp + ow for tap (dy, dx) reads input lane
    # j + (dy*Wp + dx)  ->  static circular lane roll.  The wrap-around only
    # lands in lanes that never feed a valid output pixel (max valid read lane
    # < S <= S_pad), so it is harmless.
    for n in range(Nb):
        x = x_ref[n]                                     # (Cin_pad, S_pad) bf16
        for dy in range(3):
            for dx in range(3):
                off = dy * Wp + dx
                shifted = _shift_lanes_left(x, off, S_pad, use_roll)
                t = dy * 3 + dx
                patches_ref[pl.ds(t * Cin_pad, Cin_pad),
                            pl.ds(n * S_pad, S_pad)] = shifted

    # Single MXU pass for both heads over all Nb images, f32 accumulate,
    # bias folded into the same accumulator.
    acc = jnp.dot(w_ref[...], patches_ref[...],
                  preferred_element_type=jnp.float32)
    acc = acc + b_ref[...]                               # (Cout, 1) broadcast

    for n in range(Nb):
        blk = acc[:, n * S_pad:(n + 1) * S_pad]          # 128-aligned lane slice
        k_ref[n, :, :] = blk[:Ck].astype(k_ref.dtype)
        v_ref[n, :, :] = blk[Ck:].astype(v_ref.dtype)


def keyvalue_forward(x_nchw, wk_oihw, bk, wv_oihw, bv, *,
                     out_dtype=jnp.float32, single_buffer_weights=True,
                     use_roll=True, crop=True):
    """Two fused 3x3 convs (stride 1, padding 1).  x_nchw: (N, Cin, H, W) f32.

    Returns (key, value) in NCHW (crop=True), or the wide-row channel-major
    slabs (N, C, S_pad) with valid pixel (oh, ow) at lane oh*(W+2)+ow
    (crop=False) for a downstream kernel to consume without de-widening.
    """
    N, Cin, H, W = x_nchw.shape
    Ck = wk_oihw.shape[0]
    Cv = wv_oihw.shape[0]
    Cout = Ck + Cv
    Hp, Wp = H + 2, W + 2
    Cin_pad = ((Cin + 15) // 16) * 16        # bf16 packs 16 sublanes per vreg
    S = Hp * Wp
    S_pad = ((S + 127) // 128) * 128

    # ---- batch folding: Nb images per grid step share one MXU pass ----
    out_bytes = jnp.dtype(out_dtype).itemsize
    per_image_bytes = (2 * Cin_pad * S_pad * 2          # x, double-buffered bf16
                       + 9 * Cin_pad * S_pad * 2        # patches scratch slice
                       + 2 * Cout * S_pad * out_bytes)  # outputs, double-buffered
    budget = 24 << 20                                   # conservative (all gens)
    Nb = 1
    for nb in range(1, 9):
        if N % nb != 0:
            continue
        if nb * per_image_bytes > budget:
            break
        if N >= 2 and (N // nb) < 2:                    # keep >=2 steps (v7x 2 TCs)
            break
        Nb = nb
    G = N // Nb

    # ---- input prep: cast to bf16 first, then pad (halves prep traffic) ----
    xp = jnp.pad(x_nchw.astype(jnp.bfloat16),
                 ((0, 0), (0, Cin_pad - Cin), (1, 1), (1, 1)))
    x_slab = xp.reshape(N, Cin_pad, S)
    x_slab = jnp.pad(x_slab, ((0, 0), (0, 0), (0, S_pad - S)))

    # ---- weight prep: fuse key|value along Cout, taps merged along K ----
    wf = jnp.concatenate([wk_oihw, wv_oihw], axis=0).astype(jnp.bfloat16)
    wf = jnp.pad(wf, ((0, 0), (0, Cin_pad - Cin), (0, 0), (0, 0)))
    wf = jnp.transpose(wf, (0, 2, 3, 1)).reshape(Cout, 9 * Cin_pad)
    bf = jnp.concatenate([bk, bv], axis=0).reshape(Cout, 1).astype(jnp.float32)

    # Constant-index weight/bias blocks -> single-buffer them to save VMEM.
    wb_kwargs = dict(pipeline_mode=pl.Buffered(1)) if single_buffer_weights else {}

    w_bufs = 1 if single_buffer_weights else 2
    vmem_est = (Nb * per_image_bytes
                + w_bufs * (Cout * 9 * Cin_pad * 2 + Cout * 4))
    # Raise above v5e's 16 MiB default but stay within v7x's 64 MiB physical.
    vmem_limit = int(min(64 << 20, max(32 << 20, 2 * vmem_est)))

    kernel = functools.partial(_fused_conv3x3_kernel, Wp=Wp, Ck=Ck, Nb=Nb,
                               Cin_pad=Cin_pad, S_pad=S_pad, use_roll=use_roll)

    k_wide, v_wide = pl.pallas_call(
        kernel,
        out_shape=(
            jax.ShapeDtypeStruct((N, Ck, S_pad), out_dtype),
            jax.ShapeDtypeStruct((N, Cv, S_pad), out_dtype),
        ),
        grid=(G,),
        in_specs=[
            pl.BlockSpec((Nb, Cin_pad, S_pad), lambda g: (g, 0, 0)),
            pl.BlockSpec((Cout, 9 * Cin_pad), lambda g: (0, 0), **wb_kwargs),
            pl.BlockSpec((Cout, 1), lambda g: (0, 0), **wb_kwargs),
        ],
        out_specs=(
            pl.BlockSpec((Nb, Ck, S_pad), lambda g: (g, 0, 0)),
            pl.BlockSpec((Nb, Cv, S_pad), lambda g: (g, 0, 0)),
        ),
        scratch_shapes=[pltpu.VMEM((9 * Cin_pad, Nb * S_pad), jnp.bfloat16)],
        compiler_params=pltpu.CompilerParams(
            dimension_semantics=("parallel",),
            vmem_limit_bytes=vmem_limit),
    )(x_slab, wf, bf)

    if not crop:
        return k_wide, v_wide

    # Valid output pixel (oh, ow) lives at lane oh*Wp + ow ("wide row" layout).
    key = k_wide[:, :, :H * Wp].reshape(N, Ck, H, Wp)[:, :, :, :W]
    val = v_wide[:, :, :H * Wp].reshape(N, Cv, H, Wp)[:, :, :, :W]
    return key, val


def _reference_conv(x_nchw, w_oihw, b):
    out = jax.lax.conv_general_dilated(
        x_nchw, w_oihw, window_strides=(1, 1), padding=((1, 1), (1, 1)),
        dimension_numbers=("NCHW", "OIHW", "NCHW"))
    return out + b.reshape(1, -1, 1, 1)


if __name__ == "__main__":
    # Small shapes consistent with the module: indim=4, keydim=8, valdim=16.
    N, Cin, H, W = 2, 4, 16, 16
    Ck, Cv = 8, 16

    key0 = jax.random.PRNGKey(0)
    kx, kwk, kbk, kwv, kbv = jax.random.split(key0, 5)

    x = jax.random.normal(kx, (N, Cin, H, W), jnp.float32)
    wk = 0.1 * jax.random.normal(kwk, (Ck, Cin, 3, 3), jnp.float32)
    bk = 0.1 * jax.random.normal(kbk, (Ck,), jnp.float32)
    wv = 0.1 * jax.random.normal(kwv, (Cv, Cin, 3, 3), jnp.float32)
    bv = 0.1 * jax.random.normal(kbv, (Cv,), jnp.float32)

    def _run(single_buffer_weights, use_roll):
        fn = jax.jit(functools.partial(keyvalue_forward,
                                       single_buffer_weights=single_buffer_weights,
                                       use_roll=use_roll))
        out = fn(x, wk, bk, wv, bv)
        jax.block_until_ready(out)
        return out

    # Try the fully optimized configuration first; degrade gracefully if this
    # jax build rejects pl.Buffered(1) or the bf16 lane roll lowering.
    key_out = val_out = None
    last_err = None
    for sbw, roll in ((True, True), (False, True), (False, False)):
        try:
            key_out, val_out = _run(sbw, roll)
            break
        except Exception as e:  # fall back to the next configuration
            last_err = e
    if key_out is None:
        raise last_err

    # Sanity check against XLA's conv (bf16 operands -> loose tolerance).
    ref_k = _reference_conv(x, wk, bk)
    ref_v = _reference_conv(x, wv, bv)
    assert key_out.shape == (N, Ck, H, W) and val_out.shape == (N, Cv, H, W)
    assert jnp.allclose(key_out, ref_k, rtol=5e-2, atol=5e-2), \
        float(jnp.max(jnp.abs(key_out - ref_k)))
    assert jnp.allclose(val_out, ref_v, rtol=5e-2, atol=5e-2), \
        float(jnp.max(jnp.abs(val_out - ref_v)))

    print("KERNEL_OK")
</pallas_src>

<mosaic_0001>
module attributes {stable_mosaic.version = 11 : i64} {
  func.func @_fused_conv3x3_kernel(%arg0: i32, %arg1: memref<1x16x384xbf16, #tpu.memory_space<vmem>>, %arg2: memref<24x144xbf16, #tpu.memory_space<vmem>>, %arg3: memref<24x1xf32, #tpu.memory_space<vmem>>, %arg4: memref<1x8x384xf32, #tpu.memory_space<vmem>>, %arg5: memref<1x16x384xf32, #tpu.memory_space<vmem>>, %arg6: memref<144x384xbf16, #tpu.memory_space<vmem>>) attributes {dimension_semantics = [#tpu.dimension_semantics<parallel>], iteration_bounds = array<i64: 2>, scalar_prefetch = 0 : i64, scratch_operands = 1 : i64, tpu.core_type = #tpu.core_type<tc>, window_params = [{transform_indices = @transform_0, window_bounds = array<i64: 1, 16, 384>}, {pipeline_mode = #tpu.pipeline_mode<synchronous>, transform_indices = @transform_1, window_bounds = array<i64: 24, 144>}, {pipeline_mode = #tpu.pipeline_mode<synchronous>, transform_indices = @transform_2, window_bounds = array<i64: 24, 1>}, {transform_indices = @transform_3, window_bounds = array<i64: 1, 8, 384>}, {transform_indices = @transform_4, window_bounds = array<i64: 1, 16, 384>}]} {
    %c0 = arith.constant 0 : index
    %c0_0 = arith.constant 0 : index
    %c0_1 = arith.constant 0 : index
    %0 = vector.load %arg1[%c0, %c0_0, %c0_1] : memref<1x16x384xbf16, #tpu.memory_space<vmem>>, vector<1x16x384xbf16>
    %1 = vector.shape_cast %0 : vector<1x16x384xbf16> to vector<16x384xbf16>
    %c0_2 = arith.constant 0 : index
    %c0_3 = arith.constant 0 : index
    %2 = vector.load %arg6[%c0_2, %c0_3] : memref<144x384xbf16, #tpu.memory_space<vmem>>, vector<16x384xbf16>
    tpu.vector_store %arg6[%c0_2, %c0_3], %1 {strides = array<i32>} : memref<144x384xbf16, #tpu.memory_space<vmem>>, vector<16x384xbf16>,
    %c383_i32 = arith.constant 383 : i32
    %3 = tpu.dynamic_rotate %1 by %c383_i32 dim 1 : vector<16x384xbf16>, i32 -> vector<16x384xbf16>
    %c16 = arith.constant 16 : index
    %c0_4 = arith.constant 0 : index
    %4 = vector.load %arg6[%c16, %c0_4] : memref<144x384xbf16, #tpu.memory_space<vmem>>, vector<16x384xbf16>
    tpu.vector_store %arg6[%c16, %c0_4], %3 {strides = array<i32>} : memref<144x384xbf16, #tpu.memory_space<vmem>>, vector<16x384xbf16>,
    %c382_i32 = arith.constant 382 : i32
    %5 = tpu.dynamic_rotate %1 by %c382_i32 dim 1 : vector<16x384xbf16>, i32 -> vector<16x384xbf16>
    %c32 = arith.constant 32 : index
    %c0_5 = arith.constant 0 : index
    %6 = vector.load %arg6[%c32, %c0_5] : memref<144x384xbf16, #tpu.memory_space<vmem>>, vector<16x384xbf16>
    tpu.vector_store %arg6[%c32, %c0_5], %5 {strides = array<i32>} : memref<144x384xbf16, #tpu.memory_space<vmem>>, vector<16x384xbf16>,
    %c366_i32 = arith.constant 366 : i32
    %7 = tpu.dynamic_rotate %1 by %c366_i32 dim 1 : vector<16x384xbf16>, i32 -> vector<16x384xbf16>
    %c48 = arith.constant 48 : index
    %c0_6 = arith.constant 0 : index
    %8 = vector.load %arg6[%c48, %c0_6] : memref<144x384xbf16, #tpu.memory_space<vmem>>, vector<16x384xbf16>
    tpu.vector_store %arg6[%c48, %c0_6], %7 {strides = array<i32>} : memref<144x384xbf16, #tpu.memory_space<vmem>>, vector<16x384xbf16>,
    %c365_i32 = arith.constant 365 : i32
    %9 = tpu.dynamic_rotate %1 by %c365_i32 dim 1 : vector<16x384xbf16>, i32 -> vector<16x384xbf16>
    %c64 = arith.constant 64 : index
    %c0_7 = arith.constant 0 : index
    %10 = vector.load %arg6[%c64, %c0_7] : memref<144x384xbf16, #tpu.memory_space<vmem>>, vector<16x384xbf16>
    tpu.vector_store %arg6[%c64, %c0_7], %9 {strides = array<i32>} : memref<144x384xbf16, #tpu.memory_space<vmem>>, vector<16x384xbf16>,
    %c364_i32 = arith.constant 364 : i32
    %11 = tpu.dynamic_rotate %1 by %c364_i32 dim 1 : vector<16x384xbf16>, i32 -> vector<16x384xbf16>
    %c80 = arith.constant 80 : index
    %c0_8 = arith.constant 0 : index
    %12 = vector.load %arg6[%c80, %c0_8] : memref<144x384xbf16, #tpu.memory_space<vmem>>, vector<16x384xbf16>
    tpu.vector_store %arg6[%c80, %c0_8], %11 {strides = array<i32>} : memref<144x384xbf16, #tpu.memory_space<vmem>>, vector<16x384xbf16>,
    %c348_i32 = arith.constant 348 : i32
    %13 = tpu.dynamic_rotate %1 by %c348_i32 dim 1 : vector<16x384xbf16>, i32 -> vector<16x384xbf16>
    %c96 = arith.constant 96 : index
    %c0_9 = arith.constant 0 : index
    %14 = vector.load %arg6[%c96, %c0_9] : memref<144x384xbf16, #tpu.memory_space<vmem>>, vector<16x384xbf16>
    tpu.vector_store %arg6[%c96, %c0_9], %13 {strides = array<i32>} : memref<144x384xbf16, #tpu.memory_space<vmem>>, vector<16x384xbf16>,
    %c347_i32 = arith.constant 347 : i32
    %15 = tpu.dynamic_rotate %1 by %c347_i32 dim 1 : vector<16x384xbf16>, i32 -> vector<16x384xbf16>
    %c112 = arith.constant 112 : index
    %c0_10 = arith.constant 0 : index
    %16 = vector.load %arg6[%c112, %c0_10] : memref<144x384xbf16, #tpu.memory_space<vmem>>, vector<16x384xbf16>
    tpu.vector_store %arg6[%c112, %c0_10], %15 {strides = array<i32>} : memref<144x384xbf16, #tpu.memory_space<vmem>>, vector<16x384xbf16>,
    %c346_i32 = arith.constant 346 : i32
    %17 = tpu.dynamic_rotate %1 by %c346_i32 dim 1 : vector<16x384xbf16>, i32 -> vector<16x384xbf16>
    %c128 = arith.constant 128 : index
    %c0_11 = arith.constant 0 : index
    %18 = vector.load %arg6[%c128, %c0_11] : memref<144x384xbf16, #tpu.memory_space<vmem>>, vector<16x384xbf16>
    tpu.vector_store %arg6[%c128, %c0_11], %17 {strides = array<i32>} : memref<144x384xbf16, #tpu.memory_space<vmem>>, vector<16x384xbf16>,
    %c0_12 = arith.constant 0 : index
    %c0_13 = arith.constant 0 : index
    %19 = vector.load %arg2[%c0_12, %c0_13] : memref<24x144xbf16, #tpu.memory_space<vmem>>, vector<24x144xbf16>
    %c0_14 = arith.constant 0 : index
    %c0_15 = arith.constant 0 : index
    %20 = vector.load %arg6[%c0_14, %c0_15] : memref<144x384xbf16, #tpu.memory_space<vmem>>, vector<144x384xbf16>
    %cst = arith.constant dense<0.000000e+00> : vector<24x384xf32>
    %21 = tpu.matmul %19, %20, %cst {dimension_numbers = #tpu.dot_dimension_numbers<[1], [0], [0], [1], [0, 0, 1, 1], [], []>} : vector<24x144xbf16>, vector<144x384xbf16>, vector<24x384xf32> -> vector<24x384xf32>
    %c0_16 = arith.constant 0 : index
    %c0_17 = arith.constant 0 : index
    %22 = vector.load %arg3[%c0_16, %c0_17] : memref<24x1xf32, #tpu.memory_space<vmem>>, vector<24x1xf32>
    %23 = vector.broadcast %22 : vector<24x1xf32> to vector<24x384xf32>
    %24 = arith.addf %21, %23 : vector<24x384xf32>
    %25 = vector.extract_strided_slice %24 {offsets = [0, 0], sizes = [8, 384], strides = [1, 1]} : vector<24x384xf32> to vector<8x384xf32>
    %c0_18 = arith.constant 0 : index
    %c0_19 = arith.constant 0 : index
    %c0_20 = arith.constant 0 : index
    %26 = vector.load %arg4[%c0_18, %c0_19, %c0_20] : memref<1x8x384xf32, #tpu.memory_space<vmem>>, vector<1x8x384xf32>
    %27 = vector.shape_cast %26 : vector<1x8x384xf32> to vector<8x384xf32>
    %28 = vector.shape_cast %25 : vector<8x384xf32> to vector<1x8x384xf32>
    tpu.vector_store %arg4[%c0_18, %c0_19, %c0_20], %28 {strides = array<i32>} : memref<1x8x384xf32, #tpu.memory_space<vmem>>, vector<1x8x384xf32>,
    %29 = vector.extract_strided_slice %24 {offsets = [8, 0], sizes = [16, 384], strides = [1, 1]} : vector<24x384xf32> to vector<16x384xf32>
    %c0_21 = arith.constant 0 : index
    %c0_22 = arith.constant 0 : index
    %c0_23 = arith.constant 0 : index
    %30 = vector.load %arg5[%c0_21, %c0_22, %c0_23] : memref<1x16x384xf32, #tpu.memory_space<vmem>>, vector<1x16x384xf32>
    %31 = vector.shape_cast %30 : vector<1x16x384xf32> to vector<16x384xf32>
    %32 = vector.shape_cast %29 : vector<16x384xf32> to vector<1x16x384xf32>
    tpu.vector_store %arg5[%c0_21, %c0_22, %c0_23], %32 {strides = array<i32>} : memref<1x16x384xf32, #tpu.memory_space<vmem>>, vector<1x16x384xf32>,
    return
  }
  func.func @transform_0(%arg0: i32) -> (i32, i32, i32) {
    %c0_i32 = arith.constant 0 : i32
    %c0_i32_0 = arith.constant 0 : i32
    %c0_i32_1 = arith.constant 0 : i32
    return %arg0, %c0_i32, %c0_i32_0 : i32, i32, i32
  }
  func.func @transform_1(%arg0: i32) -> (i32, i32) {
    %c0_i32 = arith.constant 0 : i32
    %c0_i32_0 = arith.constant 0 : i32
    %c0_i32_1 = arith.constant 0 : i32
    return %c0_i32, %c0_i32_0 : i32, i32
  }
  func.func @transform_2(%arg0: i32) -> (i32, i32) {
    %c0_i32 = arith.constant 0 : i32
    %c0_i32_0 = arith.constant 0 : i32
    %c0_i32_1 = arith.constant 0 : i32
    return %c0_i32, %c0_i32_0 : i32, i32
  }
  func.func @transform_3(%arg0: i32) -> (i32, i32, i32) {
    %c0_i32 = arith.constant 0 : i32
    %c0_i32_0 = arith.constant 0 : i32
    %c0_i32_1 = arith.constant 0 : i32
    return %arg0, %c0_i32, %c0_i32_0 : i32, i32, i32
  }
  func.func @transform_4(%arg0: i32) -> (i32, i32, i32) {
    %c0_i32 = arith.constant 0 : i32
    %c0_i32_0 = arith.constant 0 : i32
    %c0_i32_1 = arith.constant 0 : i32
    return %arg0, %c0_i32, %c0_i32_0 : i32, i32, i32
  }
}

module attributes {stable_mosaic.version = 11 : i64} {
  func.func @_fused_conv3x3_kernel(%arg0: i32, %arg1: memref<1x16x384xbf16, #tpu.memory_space<vmem>>, %arg2: memref<24x144xbf16, #tpu.memory_space<vmem>>, %arg3: memref<24x1xf32, #tpu.memory_space<vmem>>, %arg4: memref<1x8x384xf32, #tpu.memory_space<vmem>>, %arg5: memref<1x16x384xf32, #tpu.memory_space<vmem>>, %arg6: memref<144x384xbf16, #tpu.memory_space<vmem>>) attributes {dimension_semantics = [#tpu.dimension_semantics<parallel>], iteration_bounds = array<i64: 2>, scalar_prefetch = 0 : i64, scratch_operands = 1 : i64, tpu.core_type = #tpu.core_type<tc>, window_params = [{transform_indices = @transform_0, window_bounds = array<i64: 1, 16, 384>}, {pipeline_mode = #tpu.pipeline_mode<synchronous>, transform_indices = @transform_1, window_bounds = array<i64: 24, 144>}, {pipeline_mode = #tpu.pipeline_mode<synchronous>, transform_indices = @transform_2, window_bounds = array<i64: 24, 1>}, {transform_indices = @transform_3, window_bounds = array<i64: 1, 8, 384>}, {transform_indices = @transform_4, window_bounds = array<i64: 1, 16, 384>}]} {
    %c0 = arith.constant 0 : index
    %c0_0 = arith.constant 0 : index
    %c0_1 = arith.constant 0 : index
    %0 = vector.load %arg1[%c0, %c0_0, %c0_1] : memref<1x16x384xbf16, #tpu.memory_space<vmem>>, vector<1x16x384xbf16>
    %1 = vector.shape_cast %0 : vector<1x16x384xbf16> to vector<16x384xbf16>
    %c0_2 = arith.constant 0 : index
    %c0_3 = arith.constant 0 : index
    %2 = vector.load %arg6[%c0_2, %c0_3] : memref<144x384xbf16, #tpu.memory_space<vmem>>, vector<16x384xbf16>
    tpu.vector_store %arg6[%c0_2, %c0_3], %1 {strides = array<i32>} : memref<144x384xbf16, #tpu.memory_space<vmem>>, vector<16x384xbf16>,
    %c383_i32 = arith.constant 383 : i32
    %3 = tpu.dynamic_rotate %1 by %c383_i32 dim 1 : vector<16x384xbf16>, i32 -> vector<16x384xbf16>
    %c16 = arith.constant 16 : index
    %c0_4 = arith.constant 0 : index
    %4 = vector.load %arg6[%c16, %c0_4] : memref<144x384xbf16, #tpu.memory_space<vmem>>, vector<16x384xbf16>
    tpu.vector_store %arg6[%c16, %c0_4], %3 {strides = array<i32>} : memref<144x384xbf16, #tpu.memory_space<vmem>>, vector<16x384xbf16>,
    %c382_i32 = arith.constant 382 : i32
    %5 = tpu.dynamic_rotate %1 by %c382_i32 dim 1 : vector<16x384xbf16>, i32 -> vector<16x384xbf16>
    %c32 = arith.constant 32 : index
    %c0_5 = arith.constant 0 : index
    %6 = vector.load %arg6[%c32, %c0_5] : memref<144x384xbf16, #tpu.memory_space<vmem>>, vector<16x384xbf16>
    tpu.vector_store %arg6[%c32, %c0_5], %5 {strides = array<i32>} : memref<144x384xbf16, #tpu.memory_space<vmem>>, vector<16x384xbf16>,
    %c366_i32 = arith.constant 366 : i32
    %7 = tpu.dynamic_rotate %1 by %c366_i32 dim 1 : vector<16x384xbf16>, i32 -> vector<16x384xbf16>
    %c48 = arith.constant 48 : index
    %c0_6 = arith.constant 0 : index
    %8 = vector.load %arg6[%c48, %c0_6] : memref<144x384xbf16, #tpu.memory_space<vmem>>, vector<16x384xbf16>
    tpu.vector_store %arg6[%c48, %c0_6], %7 {strides = array<i32>} : memref<144x384xbf16, #tpu.memory_space<vmem>>, vector<16x384xbf16>,
    %c365_i32 = arith.constant 365 : i32
    %9 = tpu.dynamic_rotate %1 by %c365_i32 dim 1 : vector<16x384xbf16>, i32 -> vector<16x384xbf16>
    %c64 = arith.constant 64 : index
    %c0_7 = arith.constant 0 : index
    %10 = vector.load %arg6[%c64, %c0_7] : memref<144x384xbf16, #tpu.memory_space<vmem>>, vector<16x384xbf16>
    tpu.vector_store %arg6[%c64, %c0_7], %9 {strides = array<i32>} : memref<144x384xbf16, #tpu.memory_space<vmem>>, vector<16x384xbf16>,
    %c364_i32 = arith.constant 364 : i32
    %11 = tpu.dynamic_rotate %1 by %c364_i32 dim 1 : vector<16x384xbf16>, i32 -> vector<16x384xbf16>
    %c80 = arith.constant 80 : index
    %c0_8 = arith.constant 0 : index
    %12 = vector.load %arg6[%c80, %c0_8] : memref<144x384xbf16, #tpu.memory_space<vmem>>, vector<16x384xbf16>
    tpu.vector_store %arg6[%c80, %c0_8], %11 {strides = array<i32>} : memref<144x384xbf16, #tpu.memory_space<vmem>>, vector<16x384xbf16>,
    %c348_i32 = arith.constant 348 : i32
    %13 = tpu.dynamic_rotate %1 by %c348_i32 dim 1 : vector<16x384xbf16>, i32 -> vector<16x384xbf16>
    %c96 = arith.constant 96 : index
    %c0_9 = arith.constant 0 : index
    %14 = vector.load %arg6[%c96, %c0_9] : memref<144x384xbf16, #tpu.memory_space<vmem>>, vector<16x384xbf16>
    tpu.vector_store %arg6[%c96, %c0_9], %13 {strides = array<i32>} : memref<144x384xbf16, #tpu.memory_space<vmem>>, vector<16x384xbf16>,
    %c347_i32 = arith.constant 347 : i32
    %15 = tpu.dynamic_rotate %1 by %c347_i32 dim 1 : vector<16x384xbf16>, i32 -> vector<16x384xbf16>
    %c112 = arith.constant 112 : index
    %c0_10 = arith.constant 0 : index
    %16 = vector.load %arg6[%c112, %c0_10] : memref<144x384xbf16, #tpu.memory_space<vmem>>, vector<16x384xbf16>
    tpu.vector_store %arg6[%c112, %c0_10], %15 {strides = array<i32>} : memref<144x384xbf16, #tpu.memory_space<vmem>>, vector<16x384xbf16>,
    %c346_i32 = arith.constant 346 : i32
    %17 = tpu.dynamic_rotate %1 by %c346_i32 dim 1 : vector<16x384xbf16>, i32 -> vector<16x384xbf16>
    %c128 = arith.constant 128 : index
    %c0_11 = arith.constant 0 : index
    %18 = vector.load %arg6[%c128, %c0_11] : memref<144x384xbf16, #tpu.memory_space<vmem>>, vector<16x384xbf16>
    tpu.vector_store %arg6[%c128, %c0_11], %17 {strides = array<i32>} : memref<144x384xbf16, #tpu.memory_space<vmem>>, vector<16x384xbf16>,
    %c0_12 = arith.constant 0 : index
    %c0_13 = arith.constant 0 : index
    %19 = vector.load %arg2[%c0_12, %c0_13] : memref<24x144xbf16, #tpu.memory_space<vmem>>, vector<24x144xbf16>
    %c0_14 = arith.constant 0 : index
    %c0_15 = arith.constant 0 : index
    %20 = vector.load %arg6[%c0_14, %c0_15] : memref<144x384xbf16, #tpu.memory_space<vmem>>, vector<144x384xbf16>
    %cst = arith.constant dense<0.000000e+00> : vector<24x384xf32>
    %21 = tpu.matmul %19, %20, %cst {dimension_numbers = #tpu.dot_dimension_numbers<[1], [0], [0], [1], [0, 0, 1, 1], [], []>} : vector<24x144xbf16>, vector<144x384xbf16>, vector<24x384xf32> -> vector<24x384xf32>
    %c0_16 = arith.constant 0 : index
    %c0_17 = arith.constant 0 : index
    %22 = vector.load %arg3[%c0_16, %c0_17] : memref<24x1xf32, #tpu.memory_space<vmem>>, vector<24x1xf32>
    %23 = vector.broadcast %22 : vector<24x1xf32> to vector<24x384xf32>
    %24 = arith.addf %21, %23 : vector<24x384xf32>
    %25 = vector.extract_strided_slice %24 {offsets = [0, 0], sizes = [8, 384], strides = [1, 1]} : vector<24x384xf32> to vector<8x384xf32>
    %c0_18 = arith.constant 0 : index
    %c0_19 = arith.constant 0 : index
    %c0_20 = arith.constant 0 : index
    %26 = vector.load %arg4[%c0_18, %c0_19, %c0_20] : memref<1x8x384xf32, #tpu.memory_space<vmem>>, vector<1x8x384xf32>
    %27 = vector.shape_cast %26 : vector<1x8x384xf32> to vector<8x384xf32>
    %28 = vector.shape_cast %25 : vector<8x384xf32> to vector<1x8x384xf32>
    tpu.vector_store %arg4[%c0_18, %c0_19, %c0_20], %28 {strides = array<i32>} : memref<1x8x384xf32, #tpu.memory_space<vmem>>, vector<1x8x384xf32>,
    %29 = vector.extract_strided_slice %24 {offsets = [8, 0], sizes = [16, 384], strides = [1, 1]} : vector<24x384xf32> to vector<16x384xf32>
    %c0_21 = arith.constant 0 : index
    %c0_22 = arith.constant 0 : index
    %c0_23 = arith.constant 0 : index
    %30 = vector.load %arg5[%c0_21, %c0_22, %c0_23] : memref<1x16x384xf32, #tpu.memory_space<vmem>>, vector<1x16x384xf32>
    %31 = vector.shape_cast %30 : vector<1x16x384xf32> to vector<16x384xf32>
    %32 = vector.shape_cast %29 : vector<16x384xf32> to vector<1x16x384xf32>
    tpu.vector_store %arg5[%c0_21, %c0_22, %c0_23], %32 {strides = array<i32>} : memref<1x16x384xf32, #tpu.memory_space<vmem>>, vector<1x16x384xf32>,
    return
  }
  func.func @transform_0(%arg0: i32) -> (i32, i32, i32) {
    %c0_i32 = arith.constant 0 : i32
    %c0_i32_0 = arith.constant 0 : i32
    %c0_i32_1 = arith.constant 0 : i32
    return %arg0, %c0_i32, %c0_i32_0 : i32, i32, i32
  }
  func.func @transform_1(%arg0: i32) -> (i32, i32) {
    %c0_i32 = arith.constant 0 : i32
    %c0_i32_0 = arith.constant 0 : i32
    %c0_i32_1 = arith.constant 0 : i32
    return %c0_i32, %c0_i32_0 : i32, i32
  }
  func.func @transform_2(%arg0: i32) -> (i32, i32) {
    %c0_i32 = arith.constant 0 : i32
    %c0_i32_0 = arith.constant 0 : i32
    %c0_i32_1 = arith.constant 0 : i32
    return %c0_i32, %c0_i32_0 : i32, i32
  }
  func.func @transform_3(%arg0: i32) -> (i32, i32, i32) {
    %c0_i32 = arith.constant 0 : i32
    %c0_i32_0 = arith.constant 0 : i32
    %c0_i32_1 = arith.constant 0 : i32
    return %arg0, %c0_i32, %c0_i32_0 : i32, i32, i32
  }
  func.func @transform_4(%arg0: i32) -> (i32, i32, i32) {
    %c0_i32 = arith.constant 0 : i32
    %c0_i32_0 = arith.constant 0 : i32
    %c0_i32_1 = arith.constant 0 : i32
    return %arg0, %c0_i32, %c0_i32_0 : i32, i32, i32
  }
}

module attributes {stable_mosaic.version = 11 : i64} {
  func.func @_fused_conv3x3_kernel(%arg0: i32, %arg1: memref<1x16x384xbf16, #tpu.memory_space<vmem>>, %arg2: memref<24x144xbf16, #tpu.memory_space<vmem>>, %arg3: memref<24x1xf32, #tpu.memory_space<vmem>>, %arg4: memref<1x8x384xf32, #tpu.memory_space<vmem>>, %arg5: memref<1x16x384xf32, #tpu.memory_space<vmem>>, %arg6: memref<144x384xbf16, #tpu.memory_space<vmem>>) attributes {dimension_semantics = [#tpu.dimension_semantics<parallel>], iteration_bounds = array<i64: 2>, scalar_prefetch = 0 : i64, scratch_operands = 1 : i64, tpu.core_type = #tpu.core_type<tc>, window_params = [{transform_indices = @transform_0, window_bounds = array<i64: 1, 16, 384>}, {pipeline_mode = #tpu.pipeline_mode<synchronous>, transform_indices = @transform_1, window_bounds = array<i64: 24, 144>}, {pipeline_mode = #tpu.pipeline_mode<synchronous>, transform_indices = @transform_2, window_bounds = array<i64: 24, 1>}, {transform_indices = @transform_3, window_bounds = array<i64: 1, 8, 384>}, {transform_indices = @transform_4, window_bounds = array<i64: 1, 16, 384>}]} {
    %c0 = arith.constant 0 : index
    %c0_0 = arith.constant 0 : index
    %c0_1 = arith.constant 0 : index
    %0 = vector.load %arg1[%c0, %c0_0, %c0_1] : memref<1x16x384xbf16, #tpu.memory_space<vmem>>, vector<1x16x384xbf16>
    %1 = vector.shape_cast %0 : vector<1x16x384xbf16> to vector<16x384xbf16>
    %c0_2 = arith.constant 0 : index
    %c0_3 = arith.constant 0 : index
    %2 = vector.load %arg6[%c0_2, %c0_3] : memref<144x384xbf16, #tpu.memory_space<vmem>>, vector<16x384xbf16>
    tpu.vector_store %arg6[%c0_2, %c0_3], %1 {strides = array<i32>} : memref<144x384xbf16, #tpu.memory_space<vmem>>, vector<16x384xbf16>,
    %3 = vector.extract_strided_slice %1 {offsets = [0, 1], sizes = [16, 383], strides = [1, 1]} : vector<16x384xbf16> to vector<16x383xbf16>
    %4 = vector.extract_strided_slice %1 {offsets = [0, 0], sizes = [16, 1], strides = [1, 1]} : vector<16x384xbf16> to vector<16x1xbf16>
    %5 = tpu.concatenate %3, %4 in 1 : vector<16x383xbf16>, vector<16x1xbf16> -> vector<16x384xbf16>
    %c16 = arith.constant 16 : index
    %c0_4 = arith.constant 0 : index
    %6 = vector.load %arg6[%c16, %c0_4] : memref<144x384xbf16, #tpu.memory_space<vmem>>, vector<16x384xbf16>
    tpu.vector_store %arg6[%c16, %c0_4], %5 {strides = array<i32>} : memref<144x384xbf16, #tpu.memory_space<vmem>>, vector<16x384xbf16>,
    %7 = vector.extract_strided_slice %1 {offsets = [0, 2], sizes = [16, 382], strides = [1, 1]} : vector<16x384xbf16> to vector<16x382xbf16>
    %8 = vector.extract_strided_slice %1 {offsets = [0, 0], sizes = [16, 2], strides = [1, 1]} : vector<16x384xbf16> to vector<16x2xbf16>
    %9 = tpu.concatenate %7, %8 in 1 : vector<16x382xbf16>, vector<16x2xbf16> -> vector<16x384xbf16>
    %c32 = arith.constant 32 : index
    %c0_5 = arith.constant 0 : index
    %10 = vector.load %arg6[%c32, %c0_5] : memref<144x384xbf16, #tpu.memory_space<vmem>>, vector<16x384xbf16>
    tpu.vector_store %arg6[%c32, %c0_5], %9 {strides = array<i32>} : memref<144x384xbf16, #tpu.memory_space<vmem>>, vector<16x384xbf16>,
    %11 = vector.extract_strided_slice %1 {offsets = [0, 18], sizes = [16, 366], strides = [1, 1]} : vector<16x384xbf16> to vector<16x366xbf16>
    %12 = vector.extract_strided_slice %1 {offsets = [0, 0], sizes = [16, 18], strides = [1, 1]} : vector<16x384xbf16> to vector<16x18xbf16>
    %13 = tpu.concatenate %11, %12 in 1 : vector<16x366xbf16>, vector<16x18xbf16> -> vector<16x384xbf16>
    %c48 = arith.constant 48 : index
    %c0_6 = arith.constant 0 : index
    %14 = vector.load %arg6[%c48, %c0_6] : memref<144x384xbf16, #tpu.memory_space<vmem>>, vector<16x384xbf16>
    tpu.vector_store %arg6[%c48, %c0_6], %13 {strides = array<i32>} : memref<144x384xbf16, #tpu.memory_space<vmem>>, vector<16x384xbf16>,
    %15 = vector.extract_strided_slice %1 {offsets = [0, 19], sizes = [16, 365], strides = [1, 1]} : vector<16x384xbf16> to vector<16x365xbf16>
    %16 = vector.extract_strided_slice %1 {offsets = [0, 0], sizes = [16, 19], strides = [1, 1]} : vector<16x384xbf16> to vector<16x19xbf16>
    %17 = tpu.concatenate %15, %16 in 1 : vector<16x365xbf16>, vector<16x19xbf16> -> vector<16x384xbf16>
    %c64 = arith.constant 64 : index
    %c0_7 = arith.constant 0 : index
    %18 = vector.load %arg6[%c64, %c0_7] : memref<144x384xbf16, #tpu.memory_space<vmem>>, vector<16x384xbf16>
    tpu.vector_store %arg6[%c64, %c0_7], %17 {strides = array<i32>} : memref<144x384xbf16, #tpu.memory_space<vmem>>, vector<16x384xbf16>,
    %19 = vector.extract_strided_slice %1 {offsets = [0, 20], sizes = [16, 364], strides = [1, 1]} : vector<16x384xbf16> to vector<16x364xbf16>
    %20 = vector.extract_strided_slice %1 {offsets = [0, 0], sizes = [16, 20], strides = [1, 1]} : vector<16x384xbf16> to vector<16x20xbf16>
    %21 = tpu.concatenate %19, %20 in 1 : vector<16x364xbf16>, vector<16x20xbf16> -> vector<16x384xbf16>
    %c80 = arith.constant 80 : index
    %c0_8 = arith.constant 0 : index
    %22 = vector.load %arg6[%c80, %c0_8] : memref<144x384xbf16, #tpu.memory_space<vmem>>, vector<16x384xbf16>
    tpu.vector_store %arg6[%c80, %c0_8], %21 {strides = array<i32>} : memref<144x384xbf16, #tpu.memory_space<vmem>>, vector<16x384xbf16>,
    %23 = vector.extract_strided_slice %1 {offsets = [0, 36], sizes = [16, 348], strides = [1, 1]} : vector<16x384xbf16> to vector<16x348xbf16>
    %24 = vector.extract_strided_slice %1 {offsets = [0, 0], sizes = [16, 36], strides = [1, 1]} : vector<16x384xbf16> to vector<16x36xbf16>
    %25 = tpu.concatenate %23, %24 in 1 : vector<16x348xbf16>, vector<16x36xbf16> -> vector<16x384xbf16>
    %c96 = arith.constant 96 : index
    %c0_9 = arith.constant 0 : index
    %26 = vector.load %arg6[%c96, %c0_9] : memref<144x384xbf16, #tpu.memory_space<vmem>>, vector<16x384xbf16>
    tpu.vector_store %arg6[%c96, %c0_9], %25 {strides = array<i32>} : memref<144x384xbf16, #tpu.memory_space<vmem>>, vector<16x384xbf16>,
    %27 = vector.extract_strided_slice %1 {offsets = [0, 37], sizes = [16, 347], strides = [1, 1]} : vector<16x384xbf16> to vector<16x347xbf16>
    %28 = vector.extract_strided_slice %1 {offsets = [0, 0], sizes = [16, 37], strides = [1, 1]} : vector<16x384xbf16> to vector<16x37xbf16>
    %29 = tpu.concatenate %27, %28 in 1 : vector<16x347xbf16>, vector<16x37xbf16> -> vector<16x384xbf16>
    %c112 = arith.constant 112 : index
    %c0_10 = arith.constant 0 : index
    %30 = vector.load %arg6[%c112, %c0_10] : memref<144x384xbf16, #tpu.memory_space<vmem>>, vector<16x384xbf16>
    tpu.vector_store %arg6[%c112, %c0_10], %29 {strides = array<i32>} : memref<144x384xbf16, #tpu.memory_space<vmem>>, vector<16x384xbf16>,
    %31 = vector.extract_strided_slice %1 {offsets = [0, 38], sizes = [16, 346], strides = [1, 1]} : vector<16x384xbf16> to vector<16x346xbf16>
    %32 = vector.extract_strided_slice %1 {offsets = [0, 0], sizes = [16, 38], strides = [1, 1]} : vector<16x384xbf16> to vector<16x38xbf16>
    %33 = tpu.concatenate %31, %32 in 1 : vector<16x346xbf16>, vector<16x38xbf16> -> vector<16x384xbf16>
    %c128 = arith.constant 128 : index
    %c0_11 = arith.constant 0 : index
    %34 = vector.load %arg6[%c128, %c0_11] : memref<144x384xbf16, #tpu.memory_space<vmem>>, vector<16x384xbf16>
    tpu.vector_store %arg6[%c128, %c0_11], %33 {strides = array<i32>} : memref<144x384xbf16, #tpu.memory_space<vmem>>, vector<16x384xbf16>,
    %c0_12 = arith.constant 0 : index
    %c0_13 = arith.constant 0 : index
    %35 = vector.load %arg2[%c0_12, %c0_13] : memref<24x144xbf16, #tpu.memory_space<vmem>>, vector<24x144xbf16>
    %c0_14 = arith.constant 0 : index
    %c0_15 = arith.constant 0 : index
    %36 = vector.load %arg6[%c0_14, %c0_15] : memref<144x384xbf16, #tpu.memory_space<vmem>>, vector<144x384xbf16>
    %cst = arith.constant dense<0.000000e+00> : vector<24x384xf32>
    %37 = tpu.matmul %35, %36, %cst {dimension_numbers = #tpu.dot_dimension_numbers<[1], [0], [0], [1], [0, 0, 1, 1], [], []>} : vector<24x144xbf16>, vector<144x384xbf16>, vector<24x384xf32> -> vector<24x384xf32>
    %c0_16 = arith.constant 0 : index
    %c0_17 = arith.constant 0 : index
    %38 = vector.load %arg3[%c0_16, %c0_17] : memref<24x1xf32, #tpu.memory_space<vmem>>, vector<24x1xf32>
    %39 = vector.broadcast %38 : vector<24x1xf32> to vector<24x384xf32>
    %40 = arith.addf %37, %39 : vector<24x384xf32>
    %41 = vector.extract_strided_slice %40 {offsets = [0, 0], sizes = [8, 384], strides = [1, 1]} : vector<24x384xf32> to vector<8x384xf32>
    %c0_18 = arith.constant 0 : index
    %c0_19 = arith.constant 0 : index
    %c0_20 = arith.constant 0 : index
    %42 = vector.load %arg4[%c0_18, %c0_19, %c0_20] : memref<1x8x384xf32, #tpu.memory_space<vmem>>, vector<1x8x384xf32>
    %43 = vector.shape_cast %42 : vector<1x8x384xf32> to vector<8x384xf32>
    %44 = vector.shape_cast %41 : vector<8x384xf32> to vector<1x8x384xf32>
    tpu.vector_store %arg4[%c0_18, %c0_19, %c0_20], %44 {strides = array<i32>} : memref<1x8x384xf32, #tpu.memory_space<vmem>>, vector<1x8x384xf32>,
    %45 = vector.extract_strided_slice %40 {offsets = [8, 0], sizes = [16, 384], strides = [1, 1]} : vector<24x384xf32> to vector<16x384xf32>
    %c0_21 = arith.constant 0 : index
    %c0_22 = arith.constant 0 : index
    %c0_23 = arith.constant 0 : index
    %46 = vector.load %arg5[%c0_21, %c0_22, %c0_23] : memref<1x16x384xf32, #tpu.memory_space<vmem>>, vector<1x16x384xf32>
    %47 = vector.shape_cast %46 : vector<1x16x384xf32> to vector<16x384xf32>
    %48 = vector.shape_cast %45 : vector<16x384xf32> to vector<1x16x384xf32>
    tpu.vector_store %arg5[%c0_21, %c0_22, %c0_23], %48 {strides = array<i32>} : memref<1x16x384xf32, #tpu.memory_space<vmem>>, vector<1x16x384xf32>,
    return
  }
  func.func @transform_0(%arg0: i32) -> (i32, i32, i32) {
    %c0_i32 = arith.constant 0 : i32
    %c0_i32_0 = arith.constant 0 : i32
    %c0_i32_1 = arith.constant 0 : i32
    return %arg0, %c0_i32, %c0_i32_0 : i32, i32, i32
  }
  func.func @transform_1(%arg0: i32) -> (i32, i32) {
    %c0_i32 = arith.constant 0 : i32
    %c0_i32_0 = arith.constant 0 : i32
    %c0_i32_1 = arith.constant 0 : i32
    return %c0_i32, %c0_i32_0 : i32, i32
  }
  func.func @transform_2(%arg0: i32) -> (i32, i32) {
    %c0_i32 = arith.constant 0 : i32
    %c0_i32_0 = arith.constant 0 : i32
    %c0_i32_1 = arith.constant 0 : i32
    return %c0_i32, %c0_i32_0 : i32, i32
  }
  func.func @transform_3(%arg0: i32) -> (i32, i32, i32) {
    %c0_i32 = arith.constant 0 : i32
    %c0_i32_0 = arith.constant 0 : i32
    %c0_i32_1 = arith.constant 0 : i32
    return %arg0, %c0_i32, %c0_i32_0 : i32, i32, i32
  }
  func.func @transform_4(%arg0: i32) -> (i32, i32, i32) {
    %c0_i32 = arith.constant 0 : i32
    %c0_i32_0 = arith.constant 0 : i32
    %c0_i32_1 = arith.constant 0 : i32
    return %arg0, %c0_i32, %c0_i32_0 : i32, i32, i32
  }
}

</mosaic_0001>

<bundles_post_ra>
// kernel: keyvalue_forward.1
= control target key start
LH: loop header
LB: loop body
LE: loop exit
PB: predicated region body
PF: predicated region fallthrough
CT: control target
= control target key end

     0   :  { %s746_s15 = smov 0   ;;  %s807_s0 = inlined_call_operand.vmem [shape: bf16[2,16,384], index: 0, kind: input, shape index: {}]   ;;  %s808_s1 = inlined_call_operand.vmem [shape: bf16[24,144], index: 1, kind: input, shape index: {}]   ;;  %s809_s2 = inlined_call_operand.vmem [shape: f32[24,1], index: 2, kind: input, shape index: {}]   ;;  %s810_s3 = inlined_call_operand.vmem [shape: f32[2,8,384], index: 3, kind: output, shape index: {0}]   ;;  %s811_s4 = inlined_call_operand.vmem [shape: f32[2,16,384], index: 4, kind: output, shape index: {1}]  }
   0x1 LB: > { %s653_s16 = sadd.s32 4294967295, %s710_s15   ;;  %p657_p0 = scmp.ge.s32.totalorder %s710_s15, 1  ;;  %s710_s15 = sphi %s746_s15, %s15_s15  }
   0x2   : > { %p165_p1 = scmp.lt.s32.totalorder %s710_s15, 3 }
   0x4   : > { %p166_p2 = pnand %p657_p0, %p165_p1 }
   0x5   : > { %p196_p3 = scmp.lt.s32.totalorder (!%p166_p2), %s653_s16, 1  ;;  %v712_v0 = vmov (!%p166_p2), 0   ;;  %s713_s21 = smov (!%p166_p2), 127   ;;  %v701_v4 = vld [vmem:[%s808_s1 + $0x4] ss:$8 sps:$4 sm:$0xff] (!%p166_p2)   ;;  %vm450_vm0 = vcmask (!%p166_p2), 130048  }
   0x6   : > { %169 = sbr.rel (%p166_p2) target bundleno = 406 (0x196), region = 32  ;;  %508 = vmatprep.subr.bf16.mxu1 (!%p166_p2), %v712_v0  ;;  %693 = vset.pattern.permute.xlu0 (!%p166_p2), %v712_v0  ;;  %s714_s22 = smov (!%p166_p2), 126   ;;  %v417_v5 = vld [vmem:[%s809_s2] sm:$0xff] (!%p166_p2)  ;;  %v418_v6 = vld [vmem:[%s809_s2 + $0x8] sm:$0xff] (!%p166_p2)  ;;  %v419_v7 = vld [vmem:[%s809_s2 + $0x10] sm:$0xff] (!%p166_p2)  ;;  %vm241_vm1 = vcmask (!%p166_p2), 1039360  }
   0x7   : > { %694 = vset.pattern.permute.xlu1 (!%p166_p2), %v712_v0  ;;  %s715_s23 = smov (!%p166_p2), 110   ;;  %s716_s24 = smov (!%p166_p2), 109   ;;  %670 = vmatprep.mubr.msk.bf16.mxu1 (!%p166_p2), %vm450_vm0, %v701_v4  ;;  %vm260_vm2 = vcmask (!%p166_p2), 1031168   ;;  %vm279_vm3 = vcmask (!%p166_p2), 900096   ;;  %vm298_vm4 = vcmask (!%p166_p2), 891904   ;;  %vm317_vm5 = vcmask (!%p166_p2), 883712  }
   0x8   : > { %s717_s25 = smov (!%p166_p2), 108   ;;  %s718_s26 = smov (!%p166_p2), 92   ;;  %668 = vmatprep.mubr.msk.bf16.mxu0 (!%p166_p2), %vm450_vm0, %v701_v4  ;;  %vm336_vm6 = vcmask (!%p166_p2), 752640   ;;  %vm355_vm7 = vcmask (!%p166_p2), 744448   ;;  %vm374_vm8 = vcmask (!%p166_p2), 736256   ;;  %v389_v52 = vld [vmem:[%s808_s1 + $0x10] sm:$0xff] (!%p166_p2) }
   0x9   : > { %s719_s29 = smov (!%p166_p2), 91   ;;  %s720_s30 = smov (!%p166_p2), 90   ;;  %v699_v57 = vld [vmem:[%s808_s1] ss:$8 sps:$4 sm:$0xff] (!%p166_p2)   ;;  %v667_v58 = vcombine.high (!%p166_p2), %v389_v52, %v389_v52  ;;  %v666_v59 = vcombine.low (!%p166_p2), %v389_v52, %v389_v52 }
   0xd   : > { %s813_s16 = smov (!%p196_p3, %s653_s16), 1 }
   0xe   : > { %s674_s17 = smul.u32 24, %s813_s16 }
   0xf   : > { %s675_s18 = smul.u32 48, %s813_s16 }
  0x10   : > { %s200_s20 = scalar_lea.vmem %s807_s0, %s674_s17 }
  0x11   : > { %v695_v1 = vld [vmem:[%s200_s20 + $0x4] ss:$12 sps:$4 sm:$0xff]   ;;  %v697_v2 = vld [vmem:[%s200_s20] ss:$12 sps:$4 sm:$0xff]   ;;  %v698_v3 = vld [vmem:[%s200_s20 + $0x8] ss:$12 sps:$4 sm:$0xff]  }
  0x12   : > { %237 = vrot.lane.b32.xlu0 %v695_v1, %s713_s21  ;;  %457 = vmatprep.subr.bf16.mxu0 %v695_v1 }
  0x13   : > { %235 = vrot.lane.b32.xlu1 %v697_v2, %s713_s21  ;;  %458 = vmatpush1.bf16.msra.mxu0 %v697_v2 }
  0x14   : > { %509 = vmatpush1.bf16.msra.mxu1 %v698_v3 }
  0x15   : > { %510 = vmatprep.subr.bf16.mxu1 %v712_v0 }
  0x16   : > { %239 = vrot.lane.b32.xlu0 %v698_v3, %s713_s21  ;;  %s205_s21 = scalar_lea.vmem %s810_s3, %s674_s17 }
  0x17   : > { %256 = vrot.lane.b32.xlu1 %v695_v1, %s714_s22 }
  0x1a   : > { %258 = vrot.lane.b32.xlu0 %v698_v3, %s714_s22 }
  0x1b   : > { %254 = vrot.lane.b32.xlu1 %v697_v2, %s714_s22 }
  0x1e   : > { %275 = vrot.lane.b32.xlu0 %v695_v1, %s715_s23 }
  0x1f   : > { %277 = vrot.lane.b32.xlu1 %v698_v3, %s715_s23 }
  0x22   : > { %273 = vrot.lane.b32.xlu0 %v697_v2, %s715_s23 }
  0x23   : > { %294 = vrot.lane.b32.xlu1 %v695_v1, %s716_s24 }
  0x26   : > { %296 = vrot.lane.b32.xlu0 %v698_v3, %s716_s24 }
  0x27   : > { %292 = vrot.lane.b32.xlu1 %v697_v2, %s716_s24  ;;  %s210_s24 = scalar_lea.vmem %s811_s4, %s675_s18 }
  0x2a   : > { %313 = vrot.lane.b32.xlu0 %v695_v1, %s717_s25 }
  0x2b   : > { %315 = vrot.lane.b32.xlu1 %v698_v3, %s717_s25 }
  0x2e   : > { %311 = vrot.lane.b32.xlu0 %v697_v2, %s717_s25 }
  0x2f   : > { %332 = vrot.lane.b32.xlu1 %v695_v1, %s718_s26 }
  0x32   : > { %334 = vrot.lane.b32.xlu0 %v698_v3, %s718_s26 }
  0x33   : > { %330 = vrot.lane.b32.xlu1 %v697_v2, %s718_s26 }
  0x36   : > { %351 = vrot.lane.b32.xlu0 %v695_v1, %s719_s29 }
  0x37   : > { %353 = vrot.lane.b32.xlu1 %v698_v3, %s719_s29 }
  0x3a   : > { %349 = vrot.lane.b32.xlu0 %v697_v2, %s719_s29 }
  0x3b   : > { %370 = vrot.lane.b32.xlu1 %v695_v1, %s720_s30 }
  0x3e   : > { %372 = vrot.lane.b32.xlu0 %v698_v3, %s720_s30 }
  0x3f   : > { %368 = vrot.lane.b32.xlu1 %v697_v2, %s720_s30 }
  0x42   : > { %422 = vperm.xlu0 %693, %v417_v5  }
  0x43   : > { %427 = vperm.xlu1 %694, %v418_v6  }
  0x47   : > { %432 = vperm.xlu1 %694, %v419_v7  }
  0x84   : > { %v238_v8 = vpop.permute.xlu0 %237 }
  0x85   : > { %v236_v9 = vpop.permute.xlu1 %235 }
  0x86   : > { %v242_v14 = vsel %vm241_vm1, %v236_v9, %v238_v8 }
  0x88   : > { %v240_v10 = vpop.permute.xlu0 %239 }
  0x89   : > { %v257_v11 = vpop.permute.xlu1 %256  ;;  %v243_v12 = vsel %vm241_vm1, %v238_v8, %v240_v10  ;;  %v249_v13 = vsel %vm241_vm1, %v240_v10, %v236_v9 }
  0x8a   : > { %459 = vmatprep.subr.bf16.mxu0 %v243_v12  ;;  %511 = vmatpush1.bf16.msra.mxu1 %v249_v13 }
  0x8b   : > { %460 = vmatpush1.bf16.msra.mxu0 %v242_v14  ;;  %512 = vmatprep.subr.bf16.mxu1 %v712_v0 }
  0x8c   : > { %v259_v15 = vpop.permute.xlu0 %258 }
  0x8d   : > { %v255_v16 = vpop.permute.xlu1 %254  ;;  %v262_v17 = vsel %vm260_vm2, %v257_v11, %v259_v15 }
  0x8e   : > { %461 = vmatprep.subr.bf16.mxu0 %v262_v17  ;;  %v268_v18 = vsel %vm260_vm2, %v259_v15, %v255_v16  ;;  %v261_v19 = vsel %vm260_vm2, %v255_v16, %v257_v11 }
  0x8f   : > { %513 = vmatpush1.bf16.msra.mxu1 %v268_v18  ;;  %462 = vmatpush1.bf16.msra.mxu0 %v261_v19 }
  0x90   : > { %v276_v20 = vpop.permute.xlu0 %275  ;;  %514 = vmatprep.subr.bf16.mxu1 %v712_v0 }
  0x91   : > { %v278_v21 = vpop.permute.xlu1 %277 }
  0x92   : > { %v281_v22 = vsel %vm279_vm3, %v276_v20, %v278_v21 }
  0x93   : > { %463 = vmatprep.subr.bf16.mxu0 %v281_v22 }
  0x94   : > { %v274_v23 = vpop.permute.xlu0 %273 }
  0x95   : > { %v295_v24 = vpop.permute.xlu1 %294  ;;  %v280_v25 = vsel %vm279_vm3, %v274_v23, %v276_v20  ;;  %v287_v26 = vsel %vm279_vm3, %v278_v21, %v274_v23 }
  0x96   : > { %464 = vmatpush1.bf16.msra.mxu0 %v280_v25  ;;  %515 = vmatpush1.bf16.msra.mxu1 %v287_v26 }
  0x97   : > { %516 = vmatprep.subr.bf16.mxu1 %v712_v0 }
  0x98   : > { %v297_v27 = vpop.permute.xlu0 %296 }
  0x99   : > { %v293_v28 = vpop.permute.xlu1 %292  ;;  %v300_v29 = vsel %vm298_vm4, %v295_v24, %v297_v27 }
  0x9a   : > { %465 = vmatprep.subr.bf16.mxu0 %v300_v29  ;;  %v306_v30 = vsel %vm298_vm4, %v297_v27, %v293_v28  ;;  %v299_v31 = vsel %vm298_vm4, %v293_v28, %v295_v24 }
  0x9b   : > { %517 = vmatpush1.bf16.msra.mxu1 %v306_v30  ;;  %466 = vmatpush1.bf16.msra.mxu0 %v299_v31 }
  0x9c   : > { %v314_v32 = vpop.permute.xlu0 %313  ;;  %518 = vmatprep.subr.bf16.mxu1 %v712_v0 }
  0x9d   : > { %v316_v33 = vpop.permute.xlu1 %315 }
  0x9e   : > { %v319_v34 = vsel %vm317_vm5, %v314_v32, %v316_v33 }
  0x9f   : > { %467 = vmatprep.subr.bf16.mxu0 %v319_v34 }
  0xa0   : > { %v312_v35 = vpop.permute.xlu0 %311 }
  0xa1   : > { %v333_v36 = vpop.permute.xlu1 %332  ;;  %v318_v37 = vsel %vm317_vm5, %v312_v35, %v314_v32  ;;  %v325_v38 = vsel %vm317_vm5, %v316_v33, %v312_v35 }
  0xa2   : > { %468 = vmatpush1.bf16.msra.mxu0 %v318_v37  ;;  %519 = vmatpush1.bf16.msra.mxu1 %v325_v38 }
  0xa3   : > { %520 = vmatprep.subr.bf16.mxu1 %v712_v0 }
  0xa4   : > { %v335_v39 = vpop.permute.xlu0 %334 }
  0xa5   : > { %v331_v40 = vpop.permute.xlu1 %330  ;;  %v338_v41 = vsel %vm336_vm6, %v333_v36, %v335_v39 }
  0xa6   : > { %469 = vmatprep.subr.bf16.mxu0 %v338_v41  ;;  %v344_v42 = vsel %vm336_vm6, %v335_v39, %v331_v40  ;;  %v337_v43 = vsel %vm336_vm6, %v331_v40, %v333_v36 }
  0xa7   : > { %521 = vmatpush1.bf16.msra.mxu1 %v344_v42  ;;  %470 = vmatpush1.bf16.msra.mxu0 %v337_v43 }
  0xa8   : > { %v352_v44 = vpop.permute.xlu0 %351  ;;  %522 = vmatprep.subr.bf16.mxu1 %v712_v0 }
  0xa9   : > { %v354_v45 = vpop.permute.xlu1 %353 }
  0xaa   : > { %v357_v46 = vsel %vm355_vm7, %v352_v44, %v354_v45 }
  0xab   : > { %471 = vmatprep.subr.bf16.mxu0 %v357_v46 }
  0xac   : > { %v350_v47 = vpop.permute.xlu0 %349 }
  0xad   : > { %v371_v48 = vpop.permute.xlu1 %370  ;;  %v356_v49 = vsel %vm355_vm7, %v350_v47, %v352_v44  ;;  %v363_v50 = vsel %vm355_vm7, %v354_v45, %v350_v47 }
  0xae   : > { %472 = vmatpush1.bf16.msra.mxu0 %v356_v49  ;;  %523 = vmatpush1.bf16.msra.mxu1 %v363_v50 }
  0xaf   : > { %524 = vmatprep.subr.bf16.mxu1 %v712_v0 }
  0xb0   : > { %v373_v51 = vpop.permute.xlu0 %372 }
  0xb1   : > { %v369_v53 = vpop.permute.xlu1 %368  ;;  %v376_v54 = vsel %vm374_vm8, %v371_v48, %v373_v51 }
  0xb2   : > { %473 = vmatprep.subr.bf16.mxu0 %v376_v54  ;;  %v382_v55 = vsel %vm374_vm8, %v373_v51, %v369_v53  ;;  %v375_v56 = vsel %vm374_vm8, %v369_v53, %v371_v48 }
  0xb3   : > { %525 = vmatpush1.bf16.msra.mxu1 %v382_v55  ;;  %474 = vmatpush1.bf16.msra.mxu0 %v375_v56 }
  0xb6   : > { %541 = vmatmul.mubr.bf16.vlgmr.msra.gmra.mrb[0].mxu1 %v699_v57  ;;  %490 = vmatmul.mubr.bf16.vlgmr.msra.gmra.mrb[0].mxu0 %v699_v57 }
  0xb7   : > { %671 = vmatprep.mubr.msk.bf16.mxu1 %vm450_vm0, %v667_v58  ;;  %669 = vmatprep.mubr.msk.bf16.mxu0 %vm450_vm0, %v667_v58 }
  0xbe   : > { %549 = vmatmul.mubr.bf16.gmra.mrb[4].mxu1 %v666_v59  ;;  %500 = vmatmul.mubr.bf16.gmra.mrb[4].mxu0 %v666_v59 }
  0xc1   : > { %v423_v60 = vpop.permute.xlu0 %422 }
  0xc2   : > { %v428_v61 = vpop.permute.xlu1 %427 }
  0xc6   : > { %v433_v12 = vpop.permute.xlu1 %432 }
 0x189   : > { %v542_v62 = vpop.f32.mrb[0].mxu1  ;;  %v491_v63 = vpop.f32.mrb[0].mxu0 }
 0x18a   : > { %v543_v0 = vadd.f32 %v542_v62, %v423_v60  ;;  %v492_v1 = vadd.f32 %v491_v63, %v423_v60  ;;  %v544_v2 = vpop.f32.mrb[1].mxu1  ;;  %v493_v3 = vpop.f32.mrb[1].mxu0 }
 0x18b   : > { %v545_v4 = vpop.f32.mrb[2].mxu1  ;;  %v494_v5 = vadd.f32 %v493_v3, %v423_v60  ;;  %v495_v6 = vpop.f32.mrb[2].mxu0 }
 0x18c   : > { %558 = vst [vmem:[%s205_s21 + $0x10] sm:$0xff] %v543_v0  ;;  %556 = vst [vmem:[%s205_s21] sm:$0xff] %v492_v1  ;;  %v546_v7 = vadd.f32 %v545_v4, %v428_v61  ;;  %v496_v8 = vadd.f32 %v495_v6, %v428_v61  ;;  %v547_v9 = vpop.f32.mrb[3].mxu1  ;;  %v497_v10 = vpop.f32.mrb[3].mxu0 }
 0x18d   : > { %557 = vst [vmem:[%s205_s21 + $0x8] sm:$0xff] %v494_v5  ;;  %v498_v11 = vadd.f32 %v497_v10, %v428_v61 }
 0x18e   : > { %561 = vst [vmem:[%s210_s24 + $0x10] sm:$0xff] %v546_v7  ;;  %559 = vst [vmem:[%s210_s24] sm:$0xff] %v496_v8 }
 0x18f   : > { %560 = vst [vmem:[%s210_s24 + $0x8] sm:$0xff] %v498_v11 }
 0x191   : > { %v550_v13 = vpop.f32.mrb[4].mxu1  ;;  %v501_v14 = vpop.f32.mrb[4].mxu0 }
 0x192   : > { %v551_v15 = vadd.f32 %v550_v13, %v433_v12  ;;  %v502_v16 = vadd.f32 %v501_v14, %v433_v12  ;;  %v552_v17 = vpop.f32.mrb[5].mxu1  ;;  %v503_v18 = vpop.f32.mrb[5].mxu0 }
 0x193   : > { %v504_v19 = vadd.f32 %v503_v18, %v433_v12  ;;  %v553_v20 = vpop.f32.mrb[6].mxu1  ;;  %v505_v21 = vpop.f32.mrb[6].mxu0 }
 0x194   : > { %564 = vst [vmem:[%s210_s24 + $0x28] sm:$0xff] %v551_v15  ;;  %562 = vst [vmem:[%s210_s24 + $0x18] sm:$0xff] %v502_v16  ;;  %v554_v22 = vpop.f32.mrb[7].mxu1  ;;  %v506_v23 = vpop.f32.mrb[7].mxu0 }
 0x195   : > { %563 = vst [vmem:[%s210_s24 + $0x20] sm:$0xff] %v504_v19 }
 0x196 PF: > { %s15_s15 = sadd.s32 1, %s710_s15  }
 0x197   : > { %p12_p4 = scmp.ge.s32.totalorder %s15_s15, 4  }
 0x199   :  { %14 = sbr.rel (!%p12_p4) target bundleno = 1 (0x1), region = 74 }

</bundles_post_ra>
